<compile_context>
chip_gen: v7x
topology: tpu7x:2x2x1
jax: 0.10.0
libtpu: 0.0.40
codegen_flags: <defaults>
</compile_context>

<pallas_src>
import functools

import jax
import jax.numpy as jnp
from jax import lax
from jax.experimental import pallas as pl
from jax.experimental.pallas import tpu as pltpu


def _round_up(x, m):
    return ((x + m - 1) // m) * m


def _ntxent_tile_kernel(zi_r_ref, zj_r_ref, zi_c_ref, zj_c_ref, out_ref,
                        acc_i_ref, acc_j_ref, *,
                        inv_t, batch, tile_r, tile_c, mxu_dtype, mask_cols):
    """One (row-block, column-block) tile of the 2B x 2B NT-Xent similarity matrix.

    zi_r_ref / zj_r_ref: (tile_r, Dp) anchor blocks of the two views.
    zi_c_ref / zj_c_ref: (tile_c, Dp) column blocks of the two views.
    out_ref: (tile_r, 1) per-anchor loss contribution (written at the last column step).
    acc_i_ref / acc_j_ref: (tile_r, 1) streaming sum-exp accumulators (VMEM scratch).
    """
    r = pl.program_id(0)
    c = pl.program_id(1)

    @pl.when(c == 0)
    def _():
        acc_i_ref[...] = jnp.zeros_like(acc_i_ref)
        acc_j_ref[...] = jnp.zeros_like(acc_j_ref)

    def normalize(x):
        # Cosine normalization via rsqrt (EUP); eps matches torch's cosine_similarity.
        x = x.astype(jnp.float32)
        return x * lax.rsqrt(jnp.maximum(jnp.sum(x * x, axis=1, keepdims=True), 1e-16))

    zi_r = normalize(zi_r_ref[...])
    zj_r = normalize(zj_r_ref[...])
    zi_c = normalize(zi_c_ref[...])
    zj_c = normalize(zj_c_ref[...])

    # MXU operands (bf16 for large problems, f32 otherwise); accumulation is f32.
    ar_i = zi_r.astype(mxu_dtype)
    ar_j = zj_r.astype(mxu_dtype)
    ac_i = zi_c.astype(mxu_dtype)
    ac_j = zj_c.astype(mxu_dtype)

    dn = (((1,), (1,)), ((), ()))  # A @ B^T without an explicit transpose

    def pexp(a, b):
        cos = lax.dot_general(a, b, dn, preferred_element_type=jnp.float32)
        # Constant stabilizer m = 1/T: cos in [-1, 1] so the exp argument is in [-2/T, 0].
        return jnp.exp((cos - 1.0) * inv_t)

    p_ii = pexp(ar_i, ac_i)   # i-anchors vs i-columns
    p_ij = pexp(ar_i, ac_j)   # i-anchors vs j-columns (contains the positives)
    p_jj = pexp(ar_j, ac_j)   # j-anchors vs j-columns
    p_ji = pexp(ar_j, ac_i)   # j-anchors vs i-columns (contains the positives)

    # Self-similarity (diagonal) exclusion for the same-view blocks; pass-through when
    # the row/column ranges do not overlap.
    row_g = r * tile_r + lax.broadcasted_iota(jnp.int32, (tile_r, 1), 0)
    col_g = c * tile_c + lax.broadcasted_iota(jnp.int32, (1, tile_c), 1)
    off_diag = row_g != col_g
    p_i = jnp.where(off_diag, p_ii, 0.0) + p_ij
    p_j = jnp.where(off_diag, p_jj, 0.0) + p_ji

    if mask_cols:
        # Zero-padded batch columns must not leak into the denominators.
        col_ok = col_g < batch
        p_i = jnp.where(col_ok, p_i, 0.0)
        p_j = jnp.where(col_ok, p_j, 0.0)

    acc_i_ref[...] += jnp.sum(p_i, axis=1, keepdims=True)
    acc_j_ref[...] += jnp.sum(p_j, axis=1, keepdims=True)

    @pl.when(c == pl.num_programs(1) - 1)
    def _():
        # Positive-pair logit in f32 from the resident anchor blocks.
        # TODO(synk): for very small temperatures, keep mxu_dtype=f32 so this numerator
        # and the matching denominator entry share a precision.
        pos = jnp.sum(zi_r * zj_r, axis=1, keepdims=True) * inv_t
        lse_i = inv_t + jnp.log(acc_i_ref[...])   # add the constant stabilizer back
        lse_j = inv_t + jnp.log(acc_j_ref[...])
        out_ref[...] = lse_i + lse_j - 2.0 * pos


def tstcc_loss(tc_features1, tc_features2, temporal_contrast_loss1,
               temporal_contrast_loss2, *, temperature, lambda1, lambda2, tile=256):
    """Pallas-TPU forward of TSTCCLoss.

    tc_features1 / tc_features2: [B, D] contextual-contrast projections of the two
    augmented views; temporal_contrast_loss1/2: scalar temporal losses.
    Returns the scalar total loss (f32).
    """
    assert tc_features1.ndim == 2 and tc_features1.shape == tc_features2.shape
    assert tile % 8 == 0 and tile >= 8
    b, d = tc_features1.shape
    n = 2 * b

    # Lane / contraction dim padded to a multiple of 128 (zero columns don't change
    # dot products or norms).  Batch padded to whole tiles.
    d_pad = max(128, _round_up(d, 128))
    if b <= tile:
        b_pad = _round_up(b, 8)
        tile_r = tile_c = b_pad
    else:
        b_pad = _round_up(b, tile)
        tile_r = tile_c = tile

    def pad(x):
        if (b_pad, d_pad) == (b, d):
            return x
        return jnp.pad(x, ((0, b_pad - b), (0, d_pad - d)))

    zi = pad(tc_features1)
    zj = pad(tc_features2)

    # bf16 MXU operands only when the matmuls are big enough for the casts to pay off.
    use_bf16 = (d_pad >= 128) and (b >= 128)
    mxu_dtype = jnp.bfloat16 if use_bf16 else jnp.float32

    grid = (b_pad // tile_r, b_pad // tile_c)

    kernel = functools.partial(
        _ntxent_tile_kernel,
        inv_t=1.0 / float(temperature),
        batch=b, tile_r=tile_r, tile_c=tile_c,
        mxu_dtype=mxu_dtype, mask_cols=(b_pad != b))

    itemsize = jnp.dtype(tc_features1.dtype).itemsize
    cost = pl.CostEstimate(
        flops=2 * 4 * b_pad * b_pad * d_pad,                     # 4 (tile x tile x D) matmuls per tile
        transcendentals=4 * b_pad * b_pad,
        bytes_accessed=2 * b_pad * d_pad * itemsize * (grid[0] + 1) + b_pad * 4)

    per_anchor = pl.pallas_call(
        kernel,
        out_shape=jax.ShapeDtypeStruct((b_pad, 1), jnp.float32),
        grid_spec=pltpu.PrefetchScalarGridSpec(
            num_scalar_prefetch=0,
            grid=grid,
            in_specs=[
                pl.BlockSpec((tile_r, d_pad), lambda r, c: (r, 0)),   # zi anchor rows
                pl.BlockSpec((tile_r, d_pad), lambda r, c: (r, 0)),   # zj anchor rows
                pl.BlockSpec((tile_c, d_pad), lambda r, c: (c, 0)),   # zi columns
                pl.BlockSpec((tile_c, d_pad), lambda r, c: (c, 0)),   # zj columns
            ],
            out_specs=pl.BlockSpec((tile_r, 1), lambda r, c: (r, 0)),
            scratch_shapes=[pltpu.VMEM((tile_r, 1), jnp.float32),
                            pltpu.VMEM((tile_r, 1), jnp.float32)],
        ),
        compiler_params=pltpu.CompilerParams(
            dimension_semantics=("parallel", "arbitrary")),
        cost_estimate=cost,
    )(zi, zj, zi, zj)

    # Tiny epilogue (O(B) sum + affine) stays in XLA: a single fused scalar output is
    # incompatible with the "parallel" row-block axis, and this is negligible work.
    nt_xent = jnp.sum(per_anchor[:b, 0]) / n
    tcl = (jnp.asarray(temporal_contrast_loss1, jnp.float32).reshape(())
           + jnp.asarray(temporal_contrast_loss2, jnp.float32).reshape(()))
    return lambda2 * nt_xent + lambda1 * tcl


def _reference_loss(z_i, z_j, tcl1, tcl2, temperature, lambda1, lambda2):
    """Pure-JAX (f32) mirror of the PyTorch TSTCCLoss.forward."""
    b = z_i.shape[0]
    n = 2 * b
    z = jnp.concatenate([z_i, z_j], axis=0).astype(jnp.float32)
    zn = z / jnp.maximum(jnp.linalg.norm(z, axis=1, keepdims=True), 1e-8)
    sim = (zn @ zn.T) / temperature

    positive = jnp.concatenate([jnp.diagonal(sim, offset=b),
                                jnp.diagonal(sim, offset=-b)]).reshape(n, 1)
    idx = jnp.arange(n)
    keep = ((idx[:, None] != idx[None, :])
            & (idx[:, None] != (idx[None, :] + b))
            & ((idx[:, None] + b) != idx[None, :]))
    negatives = jnp.where(keep, sim, -jnp.inf)
    logits = jnp.concatenate([positive, negatives], axis=1)     # [N, 1 + N]

    m = jnp.max(logits, axis=1, keepdims=True)
    lse = m[:, 0] + jnp.log(jnp.sum(jnp.exp(logits - m), axis=1))
    ce = jnp.sum(lse - logits[:, 0]) / n                        # CE(reduction='sum') / N
    return lambda2 * ce + lambda1 * (tcl1 + tcl2)


if __name__ == "__main__":
    key = jax.random.PRNGKey(0)
    k1, k2 = jax.random.split(key)

    temperature, lambda1, lambda2 = 0.2, 1.0, 0.7               # TS-TCC defaults
    tc_loss1 = jnp.float32(1.2345)                              # upstream temporal losses
    tc_loss2 = jnp.float32(0.6789)

    # Case 1: ragged small shapes with a tiny tile so the (parallel x arbitrary) grid,
    # the batch/feature zero-padding and the padded-column masking are all exercised.
    b1, d1 = 20, 40
    x1 = jax.random.normal(k1, (b1, d1), dtype=jnp.float32)
    y1 = jax.random.normal(k2, (b1, d1), dtype=jnp.float32)
    loss1 = tstcc_loss(x1, y1, tc_loss1, tc_loss2, temperature=temperature,
                       lambda1=lambda1, lambda2=lambda2, tile=8)
    loss1 = jax.block_until_ready(loss1)
    ref1 = _reference_loss(x1, y1, tc_loss1, tc_loss2, temperature, lambda1, lambda2)
    assert jnp.allclose(loss1, ref1, rtol=1e-3, atol=1e-3), (loss1, ref1)

    # Case 2: lane-aligned shapes, single-block fast path.
    b2, d2 = 16, 128
    x2 = jax.random.normal(k1, (b2, d2), dtype=jnp.float32)
    y2 = jax.random.normal(k2, (b2, d2), dtype=jnp.float32)
    loss2 = tstcc_loss(x2, y2, tc_loss1, tc_loss2, temperature=temperature,
                       lambda1=lambda1, lambda2=lambda2)
    loss2 = jax.block_until_ready(loss2)
    ref2 = _reference_loss(x2, y2, tc_loss1, tc_loss2, temperature, lambda1, lambda2)
    assert jnp.allclose(loss2, ref2, rtol=1e-3, atol=1e-3), (loss2, ref2)

    print("KERNEL_OK")
</pallas_src>

<mosaic_0001>
module attributes {stable_mosaic.version = 11 : i64} {
  func.func @_ntxent_tile_kernel(%arg0: i32, %arg1: i32, %arg2: memref<8x128xf32, #tpu.memory_space<vmem>>, %arg3: memref<8x128xf32, #tpu.memory_space<vmem>>, %arg4: memref<8x128xf32, #tpu.memory_space<vmem>>, %arg5: memref<8x128xf32, #tpu.memory_space<vmem>>, %arg6: memref<8x1xf32, #tpu.memory_space<vmem>>, %arg7: memref<8x1xf32, #tpu.memory_space<vmem>>, %arg8: memref<8x1xf32, #tpu.memory_space<vmem>>) attributes {dimension_semantics = [#tpu.dimension_semantics<parallel>, #tpu.dimension_semantics<arbitrary>], iteration_bounds = array<i64: 3, 3>, scalar_prefetch = 0 : i64, scratch_operands = 2 : i64, tpu.core_type = #tpu.core_type<tc>, window_params = [{transform_indices = @transform_0, window_bounds = array<i64: 8, 128>}, {transform_indices = @transform_1, window_bounds = array<i64: 8, 128>}, {transform_indices = @transform_2, window_bounds = array<i64: 8, 128>}, {transform_indices = @transform_3, window_bounds = array<i64: 8, 128>}, {transform_indices = @transform_4, window_bounds = array<i64: 8, 1>}]} {
    %c0_i32 = arith.constant 0 : i32
    %0 = arith.cmpi eq, %arg1, %c0_i32 : i32
    %1 = arith.extui %0 : i1 to i32
    %c0_i32_0 = arith.constant 0 : i32
    %2 = arith.cmpi ne, %1, %c0_i32_0 : i32
    scf.if %2 {
      %cst_43 = arith.constant 0.000000e+00 : f32
      %103 = vector.broadcast %cst_43 : f32 to vector<8x1xf32>
      %c0_44 = arith.constant 0 : index
      %c0_45 = arith.constant 0 : index
      %104 = vector.load %arg7[%c0_44, %c0_45] : memref<8x1xf32, #tpu.memory_space<vmem>>, vector<8x1xf32>
      tpu.vector_store %arg7[%c0_44, %c0_45], %103 {strides = array<i32>} : memref<8x1xf32, #tpu.memory_space<vmem>>, vector<8x1xf32>,
      %cst_46 = arith.constant 0.000000e+00 : f32
      %105 = vector.broadcast %cst_46 : f32 to vector<8x1xf32>
      %c0_47 = arith.constant 0 : index
      %c0_48 = arith.constant 0 : index
      %106 = vector.load %arg8[%c0_47, %c0_48] : memref<8x1xf32, #tpu.memory_space<vmem>>, vector<8x1xf32>
      tpu.vector_store %arg8[%c0_47, %c0_48], %105 {strides = array<i32>} : memref<8x1xf32, #tpu.memory_space<vmem>>, vector<8x1xf32>,
    } else {
    }
    %c0 = arith.constant 0 : index
    %c0_1 = arith.constant 0 : index
    %3 = vector.load %arg2[%c0, %c0_1] : memref<8x128xf32, #tpu.memory_space<vmem>>, vector<8x128xf32>
    %4 = arith.mulf %3, %3 : vector<8x128xf32>
    %cst = arith.constant dense<0.000000e+00> : vector<8xf32>
    %5 = vector.multi_reduction <add>, %4, %cst [1] : vector<8x128xf32> to vector<8xf32>
    %6 = vector.shape_cast %5 : vector<8xf32> to vector<8x1xf32>
    %cst_2 = arith.constant 1.000000e-16 : f32
    %7 = vector.broadcast %cst_2 : f32 to vector<8x1xf32>
    %8 = arith.maximumf %6, %7 : vector<8x1xf32>
    %9 = math.rsqrt %8 : vector<8x1xf32>
    %10 = vector.broadcast %9 : vector<8x1xf32> to vector<8x128xf32>
    %11 = arith.mulf %3, %10 : vector<8x128xf32>
    %c0_3 = arith.constant 0 : index
    %c0_4 = arith.constant 0 : index
    %12 = vector.load %arg3[%c0_3, %c0_4] : memref<8x128xf32, #tpu.memory_space<vmem>>, vector<8x128xf32>
    %13 = arith.mulf %12, %12 : vector<8x128xf32>
    %cst_5 = arith.constant dense<0.000000e+00> : vector<8xf32>
    %14 = vector.multi_reduction <add>, %13, %cst_5 [1] : vector<8x128xf32> to vector<8xf32>
    %15 = vector.shape_cast %14 : vector<8xf32> to vector<8x1xf32>
    %cst_6 = arith.constant 1.000000e-16 : f32
    %16 = vector.broadcast %cst_6 : f32 to vector<8x1xf32>
    %17 = arith.maximumf %15, %16 : vector<8x1xf32>
    %18 = math.rsqrt %17 : vector<8x1xf32>
    %19 = vector.broadcast %18 : vector<8x1xf32> to vector<8x128xf32>
    %20 = arith.mulf %12, %19 : vector<8x128xf32>
    %c0_7 = arith.constant 0 : index
    %c0_8 = arith.constant 0 : index
    %21 = vector.load %arg4[%c0_7, %c0_8] : memref<8x128xf32, #tpu.memory_space<vmem>>, vector<8x128xf32>
    %22 = arith.mulf %21, %21 : vector<8x128xf32>
    %cst_9 = arith.constant dense<0.000000e+00> : vector<8xf32>
    %23 = vector.multi_reduction <add>, %22, %cst_9 [1] : vector<8x128xf32> to vector<8xf32>
    %24 = vector.shape_cast %23 : vector<8xf32> to vector<8x1xf32>
    %cst_10 = arith.constant 1.000000e-16 : f32
    %25 = vector.broadcast %cst_10 : f32 to vector<8x1xf32>
    %26 = arith.maximumf %24, %25 : vector<8x1xf32>
    %27 = math.rsqrt %26 : vector<8x1xf32>
    %28 = vector.broadcast %27 : vector<8x1xf32> to vector<8x128xf32>
    %29 = arith.mulf %21, %28 : vector<8x128xf32>
    %c0_11 = arith.constant 0 : index
    %c0_12 = arith.constant 0 : index
    %30 = vector.load %arg5[%c0_11, %c0_12] : memref<8x128xf32, #tpu.memory_space<vmem>>, vector<8x128xf32>
    %31 = arith.mulf %30, %30 : vector<8x128xf32>
    %cst_13 = arith.constant dense<0.000000e+00> : vector<8xf32>
    %32 = vector.multi_reduction <add>, %31, %cst_13 [1] : vector<8x128xf32> to vector<8xf32>
    %33 = vector.shape_cast %32 : vector<8xf32> to vector<8x1xf32>
    %cst_14 = arith.constant 1.000000e-16 : f32
    %34 = vector.broadcast %cst_14 : f32 to vector<8x1xf32>
    %35 = arith.maximumf %33, %34 : vector<8x1xf32>
    %36 = math.rsqrt %35 : vector<8x1xf32>
    %37 = vector.broadcast %36 : vector<8x1xf32> to vector<8x128xf32>
    %38 = arith.mulf %30, %37 : vector<8x128xf32>
    %cst_15 = arith.constant dense<0.000000e+00> : vector<8x8xf32>
    %39 = tpu.matmul %11, %29, %cst_15 {dimension_numbers = #tpu.dot_dimension_numbers<[1], [1], [0], [0], [0, 0, 1, 0], [], []>} : vector<8x128xf32>, vector<8x128xf32>, vector<8x8xf32> -> vector<8x8xf32>
    %cst_16 = arith.constant 1.000000e+00 : f32
    %40 = vector.broadcast %cst_16 : f32 to vector<8x8xf32>
    %41 = arith.subf %39, %40 : vector<8x8xf32>
    %cst_17 = arith.constant 5.000000e+00 : f32
    %42 = vector.broadcast %cst_17 : f32 to vector<8x8xf32>
    %43 = arith.mulf %41, %42 : vector<8x8xf32>
    %44 = math.exp %43 : vector<8x8xf32>
    %cst_18 = arith.constant dense<0.000000e+00> : vector<8x8xf32>
    %45 = tpu.matmul %11, %38, %cst_18 {dimension_numbers = #tpu.dot_dimension_numbers<[1], [1], [0], [0], [0, 0, 1, 0], [], []>} : vector<8x128xf32>, vector<8x128xf32>, vector<8x8xf32> -> vector<8x8xf32>
    %cst_19 = arith.constant 1.000000e+00 : f32
    %46 = vector.broadcast %cst_19 : f32 to vector<8x8xf32>
    %47 = arith.subf %45, %46 : vector<8x8xf32>
    %cst_20 = arith.constant 5.000000e+00 : f32
    %48 = vector.broadcast %cst_20 : f32 to vector<8x8xf32>
    %49 = arith.mulf %47, %48 : vector<8x8xf32>
    %50 = math.exp %49 : vector<8x8xf32>
    %cst_21 = arith.constant dense<0.000000e+00> : vector<8x8xf32>
    %51 = tpu.matmul %20, %38, %cst_21 {dimension_numbers = #tpu.dot_dimension_numbers<[1], [1], [0], [0], [0, 0, 1, 0], [], []>} : vector<8x128xf32>, vector<8x128xf32>, vector<8x8xf32> -> vector<8x8xf32>
    %cst_22 = arith.constant 1.000000e+00 : f32
    %52 = vector.broadcast %cst_22 : f32 to vector<8x8xf32>
    %53 = arith.subf %51, %52 : vector<8x8xf32>
    %cst_23 = arith.constant 5.000000e+00 : f32
    %54 = vector.broadcast %cst_23 : f32 to vector<8x8xf32>
    %55 = arith.mulf %53, %54 : vector<8x8xf32>
    %56 = math.exp %55 : vector<8x8xf32>
    %cst_24 = arith.constant dense<0.000000e+00> : vector<8x8xf32>
    %57 = tpu.matmul %20, %29, %cst_24 {dimension_numbers = #tpu.dot_dimension_numbers<[1], [1], [0], [0], [0, 0, 1, 0], [], []>} : vector<8x128xf32>, vector<8x128xf32>, vector<8x8xf32> -> vector<8x8xf32>
    %cst_25 = arith.constant 1.000000e+00 : f32
    %58 = vector.broadcast %cst_25 : f32 to vector<8x8xf32>
    %59 = arith.subf %57, %58 : vector<8x8xf32>
    %cst_26 = arith.constant 5.000000e+00 : f32
    %60 = vector.broadcast %cst_26 : f32 to vector<8x8xf32>
    %61 = arith.mulf %59, %60 : vector<8x8xf32>
    %62 = math.exp %61 : vector<8x8xf32>
    %c8_i32 = arith.constant 8 : i32
    %63 = arith.muli %arg0, %c8_i32 : i32
    %64 = tpu.iota {dimensions = array<i32: 0>} : vector<8x1xi32>
    %65 = vector.broadcast %63 : i32 to vector<8x1xi32>
    %66 = arith.addi %65, %64 : vector<8x1xi32>
    %c8_i32_27 = arith.constant 8 : i32
    %67 = arith.muli %arg1, %c8_i32_27 : i32
    %68 = tpu.iota {dimensions = array<i32: 1>} : vector<1x8xi32>
    %69 = vector.broadcast %67 : i32 to vector<1x8xi32>
    %70 = arith.addi %69, %68 : vector<1x8xi32>
    %71 = vector.broadcast %66 : vector<8x1xi32> to vector<8x8xi32>
    %72 = vector.broadcast %70 : vector<1x8xi32> to vector<8x8xi32>
    %73 = arith.cmpi ne, %71, %72 : vector<8x8xi32>
    %cst_28 = arith.constant 0.000000e+00 : f32
    %74 = vector.broadcast %cst_28 : f32 to vector<8x8xf32>
    %75 = arith.select %73, %44, %74 : vector<8x8xi1>, vector<8x8xf32>
    %76 = arith.addf %75, %50 : vector<8x8xf32>
    %cst_29 = arith.constant 0.000000e+00 : f32
    %77 = vector.broadcast %cst_29 : f32 to vector<8x8xf32>
    %78 = arith.select %73, %56, %77 : vector<8x8xi1>, vector<8x8xf32>
    %79 = arith.addf %78, %62 : vector<8x8xf32>
    %c20_i32 = arith.constant 20 : i32
    %80 = vector.broadcast %c20_i32 : i32 to vector<1x8xi32>
    %81 = arith.cmpi slt, %70, %80 : vector<1x8xi32>
    %cst_30 = arith.constant 0.000000e+00 : f32
    %82 = vector.shape_cast %81 : vector<1x8xi1> to vector<1x8xi1>
    %83 = vector.broadcast %82 : vector<1x8xi1> to vector<8x8xi1>
    %84 = vector.broadcast %cst_30 : f32 to vector<8x8xf32>
    %85 = arith.select %83, %76, %84 : vector<8x8xi1>, vector<8x8xf32>
    %cst_31 = arith.constant 0.000000e+00 : f32
    %86 = vector.shape_cast %81 : vector<1x8xi1> to vector<1x8xi1>
    %87 = vector.broadcast %86 : vector<1x8xi1> to vector<8x8xi1>
    %88 = vector.broadcast %cst_31 : f32 to vector<8x8xf32>
    %89 = arith.select %87, %79, %88 : vector<8x8xi1>, vector<8x8xf32>
    %c0_32 = arith.constant 0 : index
    %c0_33 = arith.constant 0 : index
    %90 = vector.load %arg7[%c0_32, %c0_33] : memref<8x1xf32, #tpu.memory_space<vmem>>, vector<8x1xf32>
    %cst_34 = arith.constant dense<0.000000e+00> : vector<8xf32>
    %91 = vector.multi_reduction <add>, %85, %cst_34 [1] : vector<8x8xf32> to vector<8xf32>
    %92 = vector.shape_cast %91 : vector<8xf32> to vector<8x1xf32>
    %93 = arith.addf %90, %92 : vector<8x1xf32>
    %c0_35 = arith.constant 0 : index
    %c0_36 = arith.constant 0 : index
    %94 = vector.load %arg7[%c0_35, %c0_36] : memref<8x1xf32, #tpu.memory_space<vmem>>, vector<8x1xf32>
    tpu.vector_store %arg7[%c0_35, %c0_36], %93 {strides = array<i32>} : memref<8x1xf32, #tpu.memory_space<vmem>>, vector<8x1xf32>,
    %c0_37 = arith.constant 0 : index
    %c0_38 = arith.constant 0 : index
    %95 = vector.load %arg8[%c0_37, %c0_38] : memref<8x1xf32, #tpu.memory_space<vmem>>, vector<8x1xf32>
    %cst_39 = arith.constant dense<0.000000e+00> : vector<8xf32>
    %96 = vector.multi_reduction <add>, %89, %cst_39 [1] : vector<8x8xf32> to vector<8xf32>
    %97 = vector.shape_cast %96 : vector<8xf32> to vector<8x1xf32>
    %98 = arith.addf %95, %97 : vector<8x1xf32>
    %c0_40 = arith.constant 0 : index
    %c0_41 = arith.constant 0 : index
    %99 = vector.load %arg8[%c0_40, %c0_41] : memref<8x1xf32, #tpu.memory_space<vmem>>, vector<8x1xf32>
    tpu.vector_store %arg8[%c0_40, %c0_41], %98 {strides = array<i32>} : memref<8x1xf32, #tpu.memory_space<vmem>>, vector<8x1xf32>,
    %c2_i32 = arith.constant 2 : i32
    %100 = arith.cmpi eq, %arg1, %c2_i32 : i32
    %101 = arith.extui %100 : i1 to i32
    %c0_i32_42 = arith.constant 0 : i32
    %102 = arith.cmpi ne, %101, %c0_i32_42 : i32
    scf.if %102 {
      %103 = arith.mulf %11, %20 : vector<8x128xf32>
      %cst_43 = arith.constant dense<0.000000e+00> : vector<8xf32>
      %104 = vector.multi_reduction <add>, %103, %cst_43 [1] : vector<8x128xf32> to vector<8xf32>
      %105 = vector.shape_cast %104 : vector<8xf32> to vector<8x1xf32>
      %cst_44 = arith.constant 5.000000e+00 : f32
      %106 = vector.broadcast %cst_44 : f32 to vector<8x1xf32>
      %107 = arith.mulf %105, %106 : vector<8x1xf32>
      %c0_45 = arith.constant 0 : index
      %c0_46 = arith.constant 0 : index
      %108 = vector.load %arg7[%c0_45, %c0_46] : memref<8x1xf32, #tpu.memory_space<vmem>>, vector<8x1xf32>
      %109 = math.log %108 : vector<8x1xf32>
      %cst_47 = arith.constant 5.000000e+00 : f32
      %110 = vector.broadcast %cst_47 : f32 to vector<8x1xf32>
      %111 = arith.addf %110, %109 : vector<8x1xf32>
      %c0_48 = arith.constant 0 : index
      %c0_49 = arith.constant 0 : index
      %112 = vector.load %arg8[%c0_48, %c0_49] : memref<8x1xf32, #tpu.memory_space<vmem>>, vector<8x1xf32>
      %113 = math.log %112 : vector<8x1xf32>
      %cst_50 = arith.constant 5.000000e+00 : f32
      %114 = vector.broadcast %cst_50 : f32 to vector<8x1xf32>
      %115 = arith.addf %114, %113 : vector<8x1xf32>
      %116 = arith.addf %111, %115 : vector<8x1xf32>
      %cst_51 = arith.constant 2.000000e+00 : f32
      %117 = vector.broadcast %cst_51 : f32 to vector<8x1xf32>
      %118 = arith.mulf %117, %107 : vector<8x1xf32>
      %119 = arith.subf %116, %118 : vector<8x1xf32>
      %c0_52 = arith.constant 0 : index
      %c0_53 = arith.constant 0 : index
      %120 = vector.load %arg6[%c0_52, %c0_53] : memref<8x1xf32, #tpu.memory_space<vmem>>, vector<8x1xf32>
      tpu.vector_store %arg6[%c0_52, %c0_53], %119 {strides = array<i32>} : memref<8x1xf32, #tpu.memory_space<vmem>>, vector<8x1xf32>,
    } else {
    }
    return
  }
  func.func @transform_0(%arg0: i32, %arg1: i32) -> (i32, i32) {
    %c0_i32 = arith.constant 0 : i32
    %c0_i32_0 = arith.constant 0 : i32
    return %arg0, %c0_i32 : i32, i32
  }
  func.func @transform_1(%arg0: i32, %arg1: i32) -> (i32, i32) {
    %c0_i32 = arith.constant 0 : i32
    %c0_i32_0 = arith.constant 0 : i32
    return %arg0, %c0_i32 : i32, i32
  }
  func.func @transform_2(%arg0: i32, %arg1: i32) -> (i32, i32) {
    %c0_i32 = arith.constant 0 : i32
    %c0_i32_0 = arith.constant 0 : i32
    return %arg1, %c0_i32 : i32, i32
  }
  func.func @transform_3(%arg0: i32, %arg1: i32) -> (i32, i32) {
    %c0_i32 = arith.constant 0 : i32
    %c0_i32_0 = arith.constant 0 : i32
    return %arg1, %c0_i32 : i32, i32
  }
  func.func @transform_4(%arg0: i32, %arg1: i32) -> (i32, i32) {
    %c0_i32 = arith.constant 0 : i32
    %c0_i32_0 = arith.constant 0 : i32
    return %arg0, %c0_i32 : i32, i32
  }
}

</mosaic_0001>

<bundles_post_ra>
// kernel: tpu_custom_call.1
= control target key start
LH: loop header
LB: loop body
LE: loop exit
PB: predicated region body
PF: predicated region fallthrough
CT: control target
= control target key end

     0   :  { %s1655_s0 = inlined_call_operand.hbm [shape: f32[24,128], index: 0, kind: input, shape index: {}]   ;;  %s1656_s1 = inlined_call_operand.hbm [shape: f32[24,128], index: 1, kind: input, shape index: {}]   ;;  %s1657_s2 = inlined_call_operand.hbm [shape: f32[24,128], index: 2, kind: input, shape index: {}]   ;;  %s1658_s3 = inlined_call_operand.hbm [shape: f32[24,128], index: 3, kind: input, shape index: {}]   ;;  %s1659_s4 = inlined_call_operand.vmem [shape: f32[24,1], index: 4, kind: output, shape index: {}]  }
   0x1   :  { %1668 = sst [smem:[#allocation17_spill]] %s1655_s0 }
   0x2   :  { %1669 = sst [smem:[#allocation18_spill]] %s1656_s1 }
   0x3   :  { %1670 = sst [smem:[#allocation19_spill]] %s1657_s2 }
   0x4   :  { %9 = vsyncpa [#allocation5], 0 }
   0x5   :  { %11 = vsyncpa [#allocation5 + $0x1], 0 }
   0x6   :  { %12 = vsyncpa [#allocation7], 0 }
   0x7   :  { %14 = vsyncpa [#allocation7 + $0x1], 0 }
   0x8   :  { %15 = vsyncpa [#allocation10], 0 }
   0x9   :  { %17 = vsyncpa [#allocation10 + $0x1], 0  ;;  %s1305_s15 = smov 0   ;;  %s1307_s16 = smov 0  }
   0xa   :  { %s1309_s17 = smov 0   ;;  %s1311_s18 = smov 0  }
   0xb   :  { %s1313_s19 = smov 0   ;;  %s1315_s20 = smov 0  }
   0xc   :  { %s1317_s21 = smov 0   ;;  %s1319_s22 = smov 0  }
   0xd   :  { %s1321_s23 = smov 0   ;;  %s1323_s24 = smov 0  }
   0xe   :  { %s1325_s25 = smov 0  }
   0xf LB: > { %s1660_s26 = sadd.s32 4294967295, %s1271_s25   ;;  %p49_p0 = scmp.ne.s32.totalorder %s1251_s20, %s1247_s19  ;;  %s1271_s25 = sphi %s1325_s25, %s23_s25   ;;  %s1267_s24 = sphi %s1323_s24, %s1703_s24   ;;  %s1263_s23 = sphi %s1321_s23, %s1702_s23   ;;  %s1259_s22 = sphi %s1319_s22, %s1701_s22   ;;  %s1255_s21 = sphi %s1317_s21, %s1700_s21   ;;  %s1251_s20 = sphi %s1315_s20, %s1699_s20   ;;  %s1247_s19 = sphi %s1313_s19, %s1698_s19   ;;  %s1243_s18 = sphi %s1311_s18, %s1697_s18   ;;  %s1239_s17 = sphi %s1309_s17, %s1696_s17   ;;  %s1235_s16 = sphi %s1307_s16, %s1695_s16   ;;  %s1231_s15 = sphi %s1305_s15, %s1694_s15  }
  0x10   : > { %p50_p1 = scmp.eq.s32.totalorder %s1271_s25, 0  ;;  %p55_p2 = scmp.ne.s32.totalorder %s1247_s19, %s1243_s18 }
  0x11   : > { %p56_p3 = scmp.eq.s32.totalorder %s1660_s26, 0  ;;  %p101_p4 = scmp.ne.s32.totalorder %s1239_s17, %s1235_s16 }
  0x12   : > { %p51_p5 = por %p50_p1, %p49_p0  ;;  %p107_p6 = scmp.ne.s32.totalorder %s1235_s16, %s1231_s15 }
  0x13   : > { %p1368_p7 = por %p56_p3, %p55_p2  ;;  %p103_p8 = por %p101_p4, %p50_p1 }
  0x14   : > { %p1372_p9 = por %p107_p6, %p56_p3  ;;  %p937_p10 = scmp.lt.s32.totalorder %s1271_s25, 9 }
  0x15   : > { %s1671_s29 = scalar_select %p1368_p7, 1, 0 }
  0x16   : > { %s1672_s30 = scalar_select %p1372_p9, 1, 0 }
  0x17   : > { %s183_s5 = sand.u32 1, %s1251_s20   ;;  %s865_s7 = sshll.u32 %s1267_s24, 7 }
  0x18   : > { %s1380_s6 = sshll.u32 %s183_s5, 3  ;;  %p1383_p11 = pnand %p937_p10, %p51_p5 }
  0x19   : > { %s201_s9 = sand.u32 1, %s1271_s25   ;;  %s1674_s1 = sld [smem:[#allocation18_spill]] }
  0x1a   : > { %s205_s13 = scalar_lea.vmem [#allocation6], %s1380_s6  ;;  %p1396_p12 = pnand %p937_p10, %p103_p8 }
  0x1b   : > { %s212_s14 = sshll.u32 %s205_s13, 4  ;;  %s1403_s18 = scalar_lea.sflag [#allocation7], %s201_s9  ;;  %s1400_s14 = int_to_ptr.vmem [resolvable:$true] %s212_s14 }
  0x1c   : > { %s1675_s15 = scalar_select %p1396_p12, 1, 0 }
  0x1d   : > { %p1051_p1 = pneg %p1383_p11 }
  0x1f   : > { %s1393_s12 = scalar_lea.hbm %s1674_s1, %s865_s7  ;;  %s1054_s13 = scalar_lea.hbm %s1674_s1, 384 }
  0x20   : > { %s1049_s26 = scalar_lea.hbm %s1393_s12, 128  ;;  %p1055_p4 = scmp.lt.u32.totalorder %s1393_s12, %s1674_s1 }
  0x21   : > { %p1050_p0 = scmp.ne.s32.totalorder %s1393_s12, %s1049_s26  ;;  %p1056_p5 = scmp.lt.u32.totalorder %s1054_s13, %s1049_s26 }
  0x22   : > { %p1058_p8 = scmp.lt.u32.totalorder %s1049_s26, %s1393_s12 }
  0x23   : > { %p1052_p2 = pnand %p1051_p1, %p1050_p0  ;;  %p1057_p6 = por %p1056_p5, %p1055_p4 }
  0x25   : > { %p1053_p3 = pneg %p1052_p2  ;;  %p1059_p10 = por %p1058_p8, %p1057_p6 }
  0x27   : > { %p1060_p13 = pnand %p1059_p10, %p1053_p3 }
  0x29   : > { %1063 = shalt.err (!%p1060_p13)
}
  0x2a   : > { %s1064_s9 = scalar_lea.vmem %s1400_s14, 128  ;;  %s1273_s10 = smov [#allocation6]  }
  0x2b   : > { %p1065_p0 = scmp.ne.s32.totalorder %s1400_s14, %s1064_s9  ;;  %s1069_s11 = sshll.u32 %s1273_s10, 4  ;;  %s1070_s11 = int_to_ptr.vmem [resolvable:$false] %s1069_s11 }
  0x2c   : > { %s1071_s27 = scalar_lea.vmem %s1070_s11, 256  ;;  %p1072_p7 = scmp.lt.s32.totalorder %s1400_s14, %s1070_s11 }
  0x2d   : > { %p1067_p2 = pnand %p1065_p0, %p1051_p1  ;;  %p1073_p4 = scmp.lt.s32.totalorder %s1071_s27, %s1064_s9 }
  0x2f   : > { %p1068_p9 = pneg %p1067_p2  ;;  %p1074_p5 = por %p1073_p4, %p1072_p7 }
  0x31   : > { %p1075_p6 = pnand %p1074_p5, %p1068_p9 }
  0x33   : > { %1078 = shalt.err (!%p1075_p6)
}
  0x34   : > { %930 = dma.hbm_to_vmem [thread:$0]  (!%p1383_p11), %s1393_s12, 128, %s1400_s14, %s1403_s18  }
  0x35   : > { %p253_p13 = scmp.lt.s32.totalorder %s1271_s25, 10  ;;  %p1676_p3 = scmp.ge.s32.totalorder %s1271_s25, 1 }
  0x36   : > { %s1678_s0 = sld [smem:[#allocation17_spill]]  ;;  %s187_s10 = scalar_lea.vmem [#allocation4], %s1380_s6 }
  0x37   : > { %p1434_p8 = pnand %p1676_p3, %p253_p13  ;;  %s194_s11 = sshll.u32 %s187_s10, 4  ;;  %s195_s11 = int_to_ptr.vmem [resolvable:$true] %s194_s11 }
  0x38   : > { %s184_s12 = scalar_lea.sflag [#allocation5], %s183_s5 }
  0x39   : > { %s1677_s26 = scalar_select %p1434_p8, 1, 0 }
  0x3c   : > { %s1443_s9 = scalar_lea.hbm %s1678_s0, %s865_s7  ;;  %s1084_s7 = scalar_lea.hbm %s1678_s0, 384 }
  0x3d   : > { %s1079_s14 = scalar_lea.hbm %s1443_s9, 128  ;;  %p1085_p0 = scmp.lt.u32.totalorder %s1443_s9, %s1678_s0 }
  0x3e   : > { %p1080_p7 = scmp.ne.s32.totalorder %s1443_s9, %s1079_s14  ;;  %p1086_p2 = scmp.lt.u32.totalorder %s1084_s7, %s1079_s14 }
  0x3f   : > { %p1088_p5 = scmp.lt.u32.totalorder %s1079_s14, %s1443_s9 }
  0x40   : > { %p1082_p9 = pnand %p1080_p7, %p1051_p1  ;;  %p1087_p4 = por %p1086_p2, %p1085_p0 }
  0x42   : > { %p1083_p10 = pneg %p1082_p9  ;;  %p1089_p6 = por %p1088_p5, %p1087_p4 }
  0x44   : > { %p1090_p13 = pnand %p1089_p6, %p1083_p10 }
  0x46   : > { %1093 = shalt.err (!%p1090_p13)
}
  0x47   : > { %s1094_s5 = scalar_lea.vmem %s195_s11, 128  ;;  %s1274_s6 = smov [#allocation4]  }
  0x48   : > { %p1095_p3 = scmp.ne.s32.totalorder %s195_s11, %s1094_s5  ;;  %s1099_s1 = sshll.u32 %s1274_s6, 4  ;;  %s1100_s1 = int_to_ptr.vmem [resolvable:$false] %s1099_s1 }
  0x49   : > { %s1101_s10 = scalar_lea.vmem %s1100_s1, 256  ;;  %p1102_p8 = scmp.lt.s32.totalorder %s195_s11, %s1100_s1 }
  0x4a   : > { %p1097_p7 = pnand %p1095_p3, %p1051_p1  ;;  %p1103_p12 = scmp.lt.s32.totalorder %s1101_s10, %s1094_s5 }
  0x4c   : > { %p1098_p9 = pneg %p1097_p7  ;;  %p1104_p0 = por %p1103_p12, %p1102_p8 }
  0x4e   : > { %p1105_p2 = pnand %p1104_p0, %p1098_p9 }
  0x50   : > { %1108 = shalt.err (!%p1105_p2)
}
  0x51   : > { %927 = dma.hbm_to_vmem [thread:$0]  (!%p1383_p11), %s1443_s9, 128, %s195_s11, %s184_s12  }
  0x52   : > { %s32_s14 = sadd.s32 1, %s1263_s23  ;;  %s94_s27 = sadd.s32 1, %s1239_s17 }
  0x53   : > { %p33_p12 = scmp.ge.s32.totalorder %s32_s14, 3  ;;  %s1664_s7 = sand.u32 1, %s1239_s17  }
  0x54   : > { %s1472_s28 = sshll.u32 %s1664_s7, 3  ;;  %s1665_s8 = sshll.u32 %s1263_s23, 7 }
  0x55   : > { %s1705_s14 = smov (%p33_p12, %s32_s14), 0  ;;  %s1680_s13 = sadd.s32 1, %s1267_s24 }
  0x56   : > { %1679 = sst [smem:[#allocation15_spill]] %s1705_s14  ;;  %s1707_s13 = smov (!%p33_p12, %s1680_s13), %s1267_s24 }
  0x57   : > { %s91_s5 = ssub.s32 %s1263_s23, %s1705_s14  ;;  %p37_p11 = scmp.ge.s32.totalorder %s1707_s13, 3 }
  0x58   : > { %p92_p1 = scmp.eq.s32.totalorder %s91_s5, 0  ;;  %s1681_s2 = sld [smem:[#allocation19_spill]] }
  0x59   : > { %s223_s6 = scalar_lea.vmem [#allocation8], %s1472_s28  ;;  %s1709_s13 = smov (%p37_p11, %s1707_s13), 0 }
  0x5a   : > { %s230_s1 = sshll.u32 %s223_s6, 4  ;;  %1682 = sst [smem:[#allocation16_spill]] %s1709_s13  ;;  %s1497_s1 = int_to_ptr.vmem [resolvable:$true] %s230_s1 }
  0x5b   : > { %s1493_s10 = scalar_select %p92_p1, %s1239_s17, %s94_s27  }
  0x5c   : > { %s39_s7 = ssub.s32 %s1267_s24, %s1709_s13  ;;  %p1684_p4 = scmp.ne.s32.totalorder %s1675_s15, 0 }
  0x5d   : > { %p1499_p8 = scmp.eq.s32.totalorder %s39_s7, 0 }
  0x5e   : > { %s1487_s12 = scalar_lea.hbm %s1681_s2, %s1665_s8  ;;  %p1111_p5 = pneg %p1684_p4 }
  0x5f   : > { %s1109_s9 = scalar_lea.hbm %s1487_s12, 128  ;;  %s1114_s27 = scalar_lea.hbm %s1681_s2, 384 }
  0x60   : > { %p1110_p10 = scmp.ne.s32.totalorder %s1487_s12, %s1109_s9  ;;  %p1115_p3 = scmp.lt.u32.totalorder %s1487_s12, %s1681_s2 }
  0x61   : > { %p1116_p7 = scmp.lt.u32.totalorder %s1114_s27, %s1109_s9  ;;  %p1118_p0 = scmp.lt.u32.totalorder %s1109_s9, %s1487_s12 }
  0x62   : > { %p1112_p6 = pnand %p1111_p5, %p1110_p10 }
  0x63   : > { %p1117_p9 = por %p1116_p7, %p1115_p3 }
  0x64   : > { %p1113_p13 = pneg %p1112_p6 }
  0x65   : > { %p1119_p2 = por %p1118_p0, %p1117_p9 }
  0x67   : > { %p1120_p12 = pnand %p1119_p2, %p1113_p13 }
  0x69   : > { %1123 = shalt.err (!%p1120_p12)
}
  0x6a   : > { %s1124_s7 = scalar_lea.vmem %s1497_s1, 128  ;;  %s1275_s11 = smov [#allocation8]  }
  0x6b   : > { %p1125_p11 = scmp.ne.s32.totalorder %s1497_s1, %s1124_s7  ;;  %s1129_s6 = sshll.u32 %s1275_s11, 4  ;;  %s1130_s6 = int_to_ptr.vmem [resolvable:$false] %s1129_s6 }
  0x6c   : > { %s1131_s0 = scalar_lea.vmem %s1130_s6, 256  ;;  %p1132_p6 = scmp.lt.s32.totalorder %s1497_s1, %s1130_s6 }
  0x6d   : > { %p1127_p1 = pnand %p1125_p11, %p1111_p5  ;;  %p1133_p3 = scmp.lt.s32.totalorder %s1131_s0, %s1124_s7 }
  0x6f   : > { %p1128_p10 = pneg %p1127_p1  ;;  %p1134_p7 = por %p1133_p3, %p1132_p6 }
  0x71   : > { %p1135_p9 = pnand %p1134_p7, %p1128_p10 }
  0x73   : > { %1138 = shalt.err (!%p1135_p9)
}
  0x74   : > { %933 = dma.hbm_to_vmem [thread:$0]  (!%p1684_p4), %s1487_s12, 128, %s1497_s1, %s1403_s18  }
  0x75   : > { %s1685_s8 = sadd.s32 1, %s1251_s20  ;;  %s1686_s27 = sshll.u32 %s1263_s23, 7 }
  0x76   : > { %s1534_s9 = scalar_select %p1499_p8, %s1251_s20, %s1685_s8  }
  0x77   : > { %s1541_s6 = scalar_lea.hbm %s1658_s3, %s1686_s27  ;;  %s241_s0 = scalar_lea.vmem [#allocation9], %s1472_s28 }
  0x78   : > { %s248_s2 = sshll.u32 %s241_s0, 4  ;;  %s1687_s13 = sand.u32 1, %s1239_s17   ;;  %s249_s2 = int_to_ptr.vmem [resolvable:$true] %s248_s2 }
  0x79   : > { %s238_s14 = scalar_lea.sflag [#allocation10], %s1687_s13  ;;  %s1139_s18 = scalar_lea.hbm %s1541_s6, 128 }
  0x7a   : > { %p1140_p13 = scmp.ne.s32.totalorder %s1541_s6, %s1139_s18  ;;  %s1144_s5 = scalar_lea.hbm %s1658_s3, 384 }
  0x7b   : > { %p1145_p2 = scmp.lt.u32.totalorder %s1541_s6, %s1658_s3  ;;  %p1146_p12 = scmp.lt.u32.totalorder %s1144_s5, %s1139_s18 }
  0x7c   : > { %p1142_p8 = pnand %p1140_p13, %p1111_p5  ;;  %p1148_p1 = scmp.lt.u32.totalorder %s1139_s18, %s1541_s6 }
  0x7d   : > { %p1147_p11 = por %p1146_p12, %p1145_p2 }
  0x7e   : > { %p1143_p0 = pneg %p1142_p8 }
  0x7f   : > { %p1149_p10 = por %p1148_p1, %p1147_p11 }
  0x81   : > { %p1150_p6 = pnand %p1149_p10, %p1143_p0 }
  0x83   : > { %1153 = shalt.err (!%p1150_p6)
}
  0x84   : > { %s1154_s28 = scalar_lea.vmem %s249_s2, 128  ;;  %s1276_s13 = smov [#allocation9]  }
  0x85   : > { %p1155_p3 = scmp.ne.s32.totalorder %s249_s2, %s1154_s28  ;;  %s1159_s7 = sshll.u32 %s1276_s13, 4  ;;  %s1160_s7 = int_to_ptr.vmem [resolvable:$false] %s1159_s7 }
  0x86   : > { %s1161_s11 = scalar_lea.vmem %s1160_s7, 256  ;;  %p1162_p13 = scmp.lt.s32.totalorder %s249_s2, %s1160_s7 }
  0x87   : > { %p1157_p7 = pnand %p1155_p3, %p1111_p5  ;;  %p1163_p8 = scmp.lt.s32.totalorder %s1161_s11, %s1154_s28 }
  0x89   : > { %p1158_p9 = pneg %p1157_p7  ;;  %p1164_p2 = por %p1163_p8, %p1162_p13 }
  0x8b   : > { %p1165_p12 = pnand %p1164_p2, %p1158_p9 }
  0x8d   : > { %1168 = shalt.err (!%p1165_p12)
}
  0x8e   : > { %936 = dma.hbm_to_vmem [thread:$0]  (!%p1684_p4), %s1541_s6, 128, %s249_s2, %s238_s14  }
  0x8f   : > { %p1688_p0 = scmp.ne.s32.totalorder %s1677_s26, 0 }
  0x90   : > { %s259_s0 = sand.u32 (!%p1688_p0), 1, %s1247_s19   ;;  %p1689_p5 = scmp.ne.s32.totalorder (!%p1688_p0), %s1671_s29, 0 }
  0x91   : > { %257 = sbr.rel (%p1688_p0) target bundleno = 749 (0x2ed), region = 36  ;;  %s1568_s18 = sshll.u32 (!%p1688_p0), %s259_s0, 3 }
  0x92   : > { %s260_s12 = scalar_lea.sflag (!%p1688_p0), [#allocation5], %s259_s0  ;;  %s263_s1 = scalar_lea.vmem (!%p1688_p0), [#allocation4], %s1568_s18 }
  0x98   : > { %1214 = dma.done.wait (%p1689_p5), %s260_s12, 128  }
  0x99   : > { %1216 = vsyncadd (%p1689_p5), %s260_s12, 4294967168  ;;  %s1690_s15 = sadd.s32 4294967295, %s1271_s25   ;;  %s272_s14 = scalar_lea.vmem [#allocation6], %s1568_s18 }
  0x9a   : > { %s268_s2 = sand.u32 1, %s1690_s15  }
  0x9b   : > { %s269_s26 = scalar_lea.sflag [#allocation7], %s268_s2 }
  0x9c   : > { %1218 = dma.done.wait (%p1689_p5), %s269_s26, 128  }
  0x9d   : > { %1220 = vsyncadd (%p1689_p5), %s269_s26, 4294967168  ;;  %s279_s6 = sand.u32 1, %s1235_s16   ;;  %p1691_p4 = scmp.ne.s32.totalorder %s1672_s30, 0 }
  0x9e   : > { %s875_s5 = sshll.u32 %s279_s6, 3 }
  0x9f   : > { %s281_s8 = scalar_lea.vmem [#allocation8], %s875_s5 }
  0xa0   : > { %1222 = dma.done.wait (%p1691_p4), %s269_s26, 128  }
  0xa1   : > { %1224 = vsyncadd (%p1691_p4), %s269_s26, 4294967168  ;;  %s287_s27 = scalar_lea.sflag [#allocation10], %s279_s6  ;;  %s290_s28 = scalar_lea.vmem [#allocation9], %s875_s5 }
  0xa2   : > { %1226 = dma.done.wait (%p1691_p4), %s287_s27, 128  }
  0xa3   : > { %1228 = vsyncadd (%p1691_p4), %s287_s27, 4294967168  ;;  %p329_p11 = scmp.lt.s32.totalorder %s1259_s22, 2  ;;  %p878_p1 = scmp.ne.s32.totalorder %s1255_s21, 0 }
  0xa4   : > { %vm337_vm0 = vcmask (!%p878_p1), 7168   ;;  %v1277_v0 = vmov (!%p878_p1), 0.0  }
  0xa5   : > { %s330_s29 = scalar_select %p329_p11, %s1259_s22, 2 }
  0xa6   : > { %336 = sbr.rel (%p878_p1) target bundleno = 173 (0xad), region = 56  ;;  %338 = vst.msk [vmem:[#allocation2] sm:$0xff] (!%p878_p1), %vm337_vm0, %v1277_v0  ;;  %339 = vst.msk [vmem:[#allocation3] sm:$0xff] (!%p878_p1), %vm337_vm0, %v1277_v0 }
  0xa7   : > { %s877_s13 = sshll.u32 %s330_s29, 3 }
  0xa8   : > { %s1596_s0 = scalar_lea.vmem %s1659_s4, %s877_s13 }
  0xad PF: > { %v354_v1 = vld [vmem:[%s281_s8] sm:$0xff]  ;;  %v361_v2 = vld [vmem:[%s290_s28] sm:$0xff]  ;;  %v1278_v9 = vmov 0.0   ;;  %vm1279_vm1 = vmmov 0   ;;  %s883_s30 = sshll.u32 %s1259_s22, 3  ;;  %v665_v32 = vlaneseq  ;;  %s884_s18 = sshll.u32 %s1255_s21, 3 }
  0xae   : > { %v340_v3 = vld [vmem:[%s263_s1] sm:$0xff]  ;;  %v355_v4 = vmul.f32 %v354_v1, %v354_v1  ;;  %v347_v6 = vld [vmem:[%s272_s14] sm:$0xff]  ;;  %v362_v7 = vmul.f32 %v361_v2, %v361_v2  ;;  %896 = vmatprep.subr.mxu0 %v1278_v9  ;;  %901 = vmatprep.subr.mxu1 %v1278_v9  ;;  %v667_v42 = vstv %s883_s30  ;;  %v672_v48 = vstv %s884_s18  ;;  %p885_p10 = scmp.ne.s32.totalorder %s1255_s21, 2 }
  0xaf   : > { %v341_v5 = vmul.f32 %v340_v3, %v340_v3  ;;  %v348_v8 = vmul.f32 %v347_v6, %v347_v6  ;;  %898 = vmatprep.mubr.msk.f32.mxu0 %vm1279_vm1, %v1278_v9  ;;  %903 = vmatprep.mubr.msk.f32.mxu1 %vm1279_vm1, %v1278_v9  ;;  %v666_v41 = vshrl.u32 %v665_v32, 7  ;;  %v671_v43 = vand.u32 127, %v665_v32 }
  0xb0   : > { %356 = vadd.xlane.f32.xlu0 %v355_v4  ;;  %vm685_vm4 = vcmask 64512   ;;  %vm690_vm5 = vcmask 7168   ;;  %v692_v4 = vld [vmem:[#allocation3] sm:$0xff] }
  0xb1   : > { %342 = vadd.xlane.f32.xlu1 %v341_v5  ;;  %v668_v50 = vadd.s32 %v667_v42, %v666_v41  ;;  %v673_v51 = vadd.s32 %v672_v48, %v671_v43 }
  0xb3   : > { %vm674_vm2 = vcmp.ne.s32.totalorder %v668_v50, %v673_v51  ;;  %vm679_vm3 = vcmp.lt.s32.totalorder %v673_v51, 20 }
  0xb4   : > { %363 = vadd.xlane.f32.xlu0 %v362_v7 }
  0xb5   : > { %349 = vadd.xlane.f32.xlu1 %v348_v8 }
 0x13d   : > { %v357_v10 = vpop.xlane.xlu0 %356 }
 0x13e   : > { %v343_v11 = vpop.xlane.xlu1 %342  ;;  %v358_v12 = vmax.f32 %v357_v10, 1e-16 }
 0x13f   : > { %v344_v13 = vmax.f32 %v343_v11, 1e-16 }
 0x140   : > { %1029 = vrsqrt.f32 %v358_v12 }
 0x141   : > { %v364_v14 = vpop.xlane.xlu0 %363  ;;  %1031 = vrsqrt.f32 %v344_v13 }
 0x142   : > { %v350_v15 = vpop.xlane.xlu1 %349  ;;  %v365_v16 = vmax.f32 %v364_v14, 1e-16 }
 0x143   : > { %v351_v17 = vmax.f32 %v350_v15, 1e-16 }
 0x144   : > { %1033 = vrsqrt.f32 %v365_v16 }
 0x145   : > { %1035 = vrsqrt.f32 %v351_v17 }
 0x14a   : > { %v1030_v18 = vpop.eup %1029 }
 0x14b   : > { %v1032_v19 = vpop.eup %1031  ;;  %v360_v20 = vmul.f32 %v1030_v18, %v354_v1  ;;  %v684_v1 = vld [vmem:[#allocation2] sm:$0xff] }
 0x14c   : > { %v1603_v21 = vmul.f32 %v1032_v19, %v340_v3 }
 0x14d   : > { %897 = vmatpush3.xpose.msra.mxu0 %v360_v20 }
 0x14e   : > { %v1034_v22 = vpop.eup %1033  ;;  %906 = vmatprep.subr.mxu0 %v1278_v9 }
 0x14f   : > { %v1036_v23 = vpop.eup %1035  ;;  %v367_v24 = vmul.f32 %v1034_v22, %v361_v2 }
 0x150   : > { %899 = vmatmul.mubr.f32.vlgmr.msra.gmra.mrb[0].mxu0 %v1603_v21  ;;  %v1606_v25 = vmul.f32 %v1036_v23, %v347_v6 }
 0x151   : > { %902 = vmatpush3.xpose.msra.mxu1 %v367_v24  ;;  %907 = vmatpush3.xpose.msra.mxu0 %v367_v24 }
 0x152   : > { %911 = vmatprep.subr.mxu1 %v1278_v9  ;;  %908 = vmatprep.mubr.msk.f32.mxu0 %vm1279_vm1, %v1278_v9  ;;  %v702_v7 = vmul.f32 (!%p885_p10), %v1606_v25, %v1603_v21 }
 0x154   : > { %904 = vmatmul.mubr.f32.vlgmr.msra.gmra.mrb[0].mxu1 %v1603_v21  ;;  %909 = vmatmul.mubr.f32.vlgmr.msra.gmra.mrb[2].mxu0 %v1606_v25 }
 0x155   : > { %912 = vmatpush3.xpose.msra.mxu1 %v360_v20  ;;  %913 = vmatprep.mubr.msk.f32.mxu1 %vm1279_vm1, %v1278_v9 }
 0x158   : > { %914 = vmatmul.mubr.f32.vlgmr.msra.gmra.mrb[2].mxu1 %v1606_v25 }
 0x223   : > { %v434_v26 = vpop.f32.mrb[0].mxu0 }
 0x224   : > { %v879_v27 = vadd.f32 -1.0, %v434_v26  ;;  %v900_v28 = vpop.f32.mrb[1].mxu0 }
 0x226   : > { %v439_v29 = vmul.f32 5.0, %v879_v27 }
 0x227   : > { %v508_v30 = vpop.f32.mrb[0].mxu1  ;;  %v582_v31 = vpop.f32.mrb[2].mxu0 }
 0x228   : > { %v440_v33 = vmul.f32 1.442695, %v439_v29  ;;  %v880_v34 = vadd.f32 -1.0, %v508_v30  ;;  %v905_v35 = vpop.f32.mrb[1].mxu1  ;;  %v881_v36 = vadd.f32 -1.0, %v582_v31  ;;  %v910_v37 = vpop.f32.mrb[3].mxu0 }
 0x22a   : > { %1037 = vpow2.f32 %v440_v33  ;;  %v513_v38 = vmul.f32 5.0, %v880_v34  ;;  %v587_v39 = vmul.f32 5.0, %v881_v36 }
 0x22b   : > { %v656_v40 = vpop.f32.mrb[2].mxu1 }
 0x22c   : > { %v514_v44 = vmul.f32 1.442695, %v513_v38  ;;  %v588_v45 = vmul.f32 1.442695, %v587_v39  ;;  %v882_v46 = vadd.f32 -1.0, %v656_v40  ;;  %v915_v47 = vpop.f32.mrb[3].mxu1 }
 0x22e   : > { %1039 = vpow2.f32 %v514_v44  ;;  %v661_v49 = vmul.f32 5.0, %v882_v46 }
 0x22f   : > { %1041 = vpow2.f32 %v588_v45 }
 0x230   : > { %v662_v52 = vmul.f32 1.442695, %v661_v49 }
 0x232   : > { %1043 = vpow2.f32 %v662_v52 }
 0x234   : > { %v1038_v53 = vpop.eup %1037 }
 0x235   : > { %v675_v54 = vsel %vm674_vm2, %v1038_v53, 0.0 }
 0x238   : > { %v1040_v55 = vpop.eup %1039 }
 0x239   : > { %v1042_v56 = vpop.eup %1041  ;;  %v676_v57 = vadd.f32 %v1040_v55, %v675_v54 }
 0x23a   : > { %v677_v58 = vsel %vm674_vm2, %v1042_v56, 0.0 }
 0x23b   : > { %v682_v59 = vsel %vm679_vm3, %v676_v57, 0.0 }
 0x23c   : > { %v1044_v60 = vpop.eup %1043  ;;  %v686_v61 = vsel %vm685_vm4, %v682_v59, 0.0 }
 0x23d   : > { %687 = vadd.xlane.f32.xlu0 %v686_v61  ;;  %v678_v62 = vadd.f32 %v1044_v60, %v677_v58 }
 0x23f   : > { %v683_v63 = vsel %vm679_vm3, %v678_v62, 0.0 }
 0x240   : > { %v693_v0 = vsel %vm685_vm4, %v683_v63, 0.0 }
 0x241   : > { %694 = vadd.xlane.f32.xlu1 %v693_v0  ;;  %703 = vadd.xlane.f32.xlu0 (!%p885_p10), %v702_v7 }
 0x2ca   : > { %v688_v2 = vpop.xlane.xlu0 %687 }
 0x2cb   : > { %v689_v3 = vadd.f32 %v688_v2, %v684_v1  ;;  %701 = sbr.rel (%p885_p10) target bundleno = 749 (0x2ed), region = 60 }
 0x2cd   : > { %691 = vst.msk [vmem:[#allocation2] sm:$0xff] %vm690_vm5, %v689_v3 }
 0x2ce   : > { %v695_v5 = vpop.xlane.xlu1 %694  ;;  %v704_v16 = vpop.xlane.xlu0 (!%p885_p10), %703 }
 0x2cf   : > { %v696_v6 = vadd.f32 %v695_v5, %v692_v4  ;;  %v705_v17 = vmul.f32 (!%p885_p10), 5.0, %v704_v16 }
 0x2d1   : > { %697 = vst.msk [vmem:[#allocation3] sm:$0xff] %vm690_vm5, %v696_v6  ;;  %v715_v19 = vmul.f32 (!%p885_p10), 2.0, %v705_v17 }
 0x2d4   : > { %v706_v8 = vld [vmem:[#allocation2] sm:$0xff] }
 0x2d5   : > { %1045 = vlog2.f32 %v706_v8 }
 0x2d8   : > { %v710_v9 = vld [vmem:[#allocation3] sm:$0xff] }
 0x2d9   : > { %1047 = vlog2.f32 %v710_v9 }
 0x2df   : > { %v1046_v10 = vpop.eup %1045 }
 0x2e0   : > { %v708_v12 = vmul.f32 0.6931472, %v1046_v10 }
 0x2e2   : > { %v709_v14 = vadd.f32 5.0, %v708_v12 }
 0x2e3   : > { %v1048_v11 = vpop.eup %1047 }
 0x2e4   : > { %v712_v13 = vmul.f32 0.6931472, %v1048_v11 }
 0x2e6   : > { %v713_v15 = vadd.f32 5.0, %v712_v13 }
 0x2e8   : > { %v714_v18 = vadd.f32 %v713_v15, %v709_v14 }
 0x2ea   : > { %v716_v20 = vsub.f32 %v714_v18, %v715_v19 }
 0x2ec   : > { %717 = vst.msk [vmem:[%s1596_s0] sm:$0xff] %vm690_vm5, %v716_v20 }
 0x2ed PF: > { %s23_s25 = sadd.s32 1, %s1271_s25   ;;  %s1692_s12 = sld [smem:[#allocation15_spill]] }
 0x2ee   : > { %p20_p6 = scmp.ge.s32.totalorder %s23_s25, 11   ;;  %s1693_s1 = sld [smem:[#allocation16_spill]] }
 0x2ef   : > { %s1694_s15 = smov %s1235_s16  ;;  %s1695_s16 = smov %s1239_s17 }
 0x2f0   : > { %s1696_s17 = smov %s1493_s10  ;;  %s1697_s18 = smov %s1247_s19 }
 0x2f1   : > { %s1698_s19 = smov %s1251_s20  ;;  %s1699_s20 = smov %s1534_s9 }
 0x2f2   : > { %s1700_s21 = smov %s1263_s23  ;;  %s1701_s22 = smov %s1267_s24 }
 0x2f3   : > { %s1702_s23 = smov %s1692_s12  ;;  %22 = sbr.rel (!%p20_p6) target bundleno = 15 (0xf), region = 121 }
 0x2f4   : > { %s1703_s24 = smov %s1693_s1 }
 0x2fa   :  { %737 = vsyncpa [#allocation5], 1 }
 0x2fb   :  { %739 = vsyncpa [#allocation5 + $0x1], 1 }
 0x2fc   :  { %740 = vsyncpa [#allocation7], 1 }
 0x2fd   :  { %742 = vsyncpa [#allocation7 + $0x1], 1 }
 0x2fe   :  { %743 = vsyncpa [#allocation10], 1 }
 0x2ff   :  { %745 = vsyncpa [#allocation10 + $0x1], 1 }

</bundles_post_ra>
